<compile_context>
chip_gen: v7x
topology: tpu7x:2x2x1
jax: 0.10.0
libtpu: 0.0.40
codegen_flags: <defaults>
</compile_context>

<pallas_src>
import jax
import jax.numpy as jnp
from jax.experimental import pallas as pl
from jax.experimental.pallas import tpu as pltpu


def _round_up(x, m):
    return ((x + m - 1) // m) * m


def _cdiv(a, b):
    return -(-a // b)


def _pick_tile(size, max_tile, align):
    """Tile <= max_tile for a dim of length `size` (> max_tile).

    Prefers an exact, `align`-aligned divisor of `size` (no zero padding, no
    extra HBM pass for padding); falls back to a near-even split rounded up to
    `align` (minimal padding instead of up-to-~50% with naive round_up).
    """
    ntiles = _cdiv(size, max_tile)
    for n in range(ntiles, min(ntiles + 8, size) + 1):
        tile = size // n
        if size % n == 0 and tile % align == 0 and tile <= max_tile:
            return tile
    return _round_up(_cdiv(size, ntiles), align)


def _linear_kernel_f32(x_ref, w_ref, b_ref, o_ref):
    """f32 output: accumulate directly into the resident output block."""
    k = pl.program_id(2)
    prod = jnp.dot(x_ref[...], w_ref[...], preferred_element_type=jnp.float32)

    @pl.when(k == 0)
    def _():
        o_ref[...] = prod            # direct store: no zero-fill pass

    @pl.when(k > 0)
    def _():
        o_ref[...] += prod

    @pl.when(k == pl.num_programs(2) - 1)
    def _():
        o_ref[...] += b_ref[...]


def _linear_kernel_acc(x_ref, w_ref, b_ref, o_ref, acc_ref):
    """Low-precision output: f32 VMEM accumulator, cast in the epilogue."""
    k = pl.program_id(2)
    prod = jnp.dot(x_ref[...], w_ref[...], preferred_element_type=jnp.float32)

    @pl.when(k == 0)
    def _():
        acc_ref[...] = prod          # direct store: no zero-fill pass

    @pl.when(k > 0)
    def _():
        acc_ref[...] += prod

    @pl.when(k == pl.num_programs(2) - 1)
    def _():
        o_ref[...] = (acc_ref[...] + b_ref[...]).astype(o_ref.dtype)


def linear_encoder(x, weight, bias, *, compute_dtype=jnp.bfloat16,
                   max_tm=512, max_tn=512, max_tk=512, force_pallas=False):
    """Pallas TPU equivalent of nn.Linear: y = x @ weight.T + bias.

    x:      [B, S, H]
    weight: [O, H]  (PyTorch nn.Linear layout; transposed once in the wrapper —
                     in a real module the [H, O] copy would be cached at init)
    bias:   [O]
    returns [B, S, O] in x.dtype; MXU inputs cast to `compute_dtype`
    (default bf16), accumulation always f32.
    """
    B, S, H = x.shape
    O = weight.shape[0]
    M = B * S
    out_dtype = x.dtype
    out_itemsize = jnp.dtype(out_dtype).itemsize

    if M == 0:                                   # empty batch guard
        return jnp.zeros((B, S, O), out_dtype)

    cdt = jnp.dtype(compute_dtype) if compute_dtype is not None else jnp.dtype(x.dtype)

    # Tiny-shape fast path: one undersized grid point dominated by launch/pad/
    # slice overhead — plain XLA fuses it and is strictly faster.
    if not force_pallas and (M * H * O) < (128 * 128 * 256):
        y = jnp.dot(x.reshape(M, H).astype(cdt), weight.T.astype(cdt),
                    preferred_element_type=jnp.float32)
        y = (y + bias.astype(jnp.float32)).astype(out_dtype)
        return y.reshape(B, S, O)

    # ---- operand prep (weight pre-transposed to [H, O]; bias kept f32) ------
    x2 = x.reshape(M, H)
    if x2.dtype != cdt:
        x2 = x2.astype(cdt)
    w_t = weight.T                               # [H, O]; static param in practice
    if w_t.dtype != cdt:
        w_t = w_t.astype(cdt)
    b2 = bias.astype(jnp.float32)

    itemsize = cdt.itemsize
    align_m = {4: 8, 2: 16, 1: 32}.get(itemsize, 8)   # sublane multiple per dtype

    # ---- tile selection ------------------------------------------------------
    # M: full-dim block when small (no pad, no slice), else near-even divisor.
    if M <= max_tm:
        tm, Mp = M, M
    else:
        tm = _pick_tile(M, max_tm, align_m)
        Mp = _round_up(M, tm)

    # N: lane-dense 128-multiples.
    Op = _round_up(O, 128)
    if Op <= max_tn:
        tn, Np = Op, Op
    else:
        tn = _pick_tile(Op, max_tn, 128)
        Np = _round_up(Op, tn)

    # K: full-dim block when small (no zero-pad of x along K), else 128-aligned
    # near-even divisor.  K padding (when unavoidable) must stay zero-filled.
    if H <= max_tk:
        tk, Hp = H, H
    else:
        tk = _pick_tile(H, max_tk, 128)
        Hp = _round_up(H, tk)

    # v7x megacore: make sure there are >= 2 parallel (i, j) tiles when possible.
    if Mp // tm == 1 and Np // tn == 1 and Np >= 256 and (Np // 2) % 128 == 0:
        tn = Np // 2

    # ---- zero-pad only what is genuinely needed ------------------------------
    pad_m, pad_k, pad_n = Mp - M, Hp - H, Np - O
    if pad_m or pad_k:
        x2 = jnp.pad(x2, ((0, pad_m), (0, pad_k)))
    if pad_k or pad_n:
        w_t = jnp.pad(w_t, ((0, pad_k), (0, pad_n)))
    if pad_n:
        b2 = jnp.pad(b2, (0, pad_n))
    b2 = b2.reshape(1, Np)

    grid = (Mp // tm, Np // tn, Hp // tk)

    out_is_f32 = jnp.dtype(out_dtype) == jnp.dtype(jnp.float32)
    if out_is_f32:
        kernel, scratch = _linear_kernel_f32, []
    else:
        kernel, scratch = _linear_kernel_acc, [pltpu.VMEM((tm, tn), jnp.float32)]

    # VMEM budget: double-buffered x/W/bias/out tiles (+ f32 acc), with headroom,
    # capped safely under the v7x 64 MiB/TC limit.
    vmem_need = (2 * (tm * tk + tk * tn) * itemsize
                 + 2 * tn * 4
                 + 2 * tm * tn * out_itemsize
                 + (0 if out_is_f32 else tm * tn * 4))
    vmem_limit = int(min(max(2 * vmem_need, 16 << 20), 48 << 20))

    cost = pl.CostEstimate(
        flops=2 * M * H * O,
        transcendentals=0,
        bytes_accessed=int((M * H + H * O) * itemsize + O * 4 + M * O * out_itemsize))

    out = pl.pallas_call(
        kernel,
        out_shape=jax.ShapeDtypeStruct((Mp, Np), out_dtype),
        grid_spec=pltpu.PrefetchScalarGridSpec(
            num_scalar_prefetch=0,
            grid=grid,
            in_specs=[
                pl.BlockSpec((tm, tk), lambda i, j, k: (i, k)),   # x rows
                pl.BlockSpec((tk, tn), lambda i, j, k: (k, j)),   # W^T [H, O]
                pl.BlockSpec((1, tn), lambda i, j, k: (0, j)),    # bias row
            ],
            out_specs=pl.BlockSpec((tm, tn), lambda i, j, k: (i, j)),
            scratch_shapes=scratch,
        ),
        compiler_params=pltpu.CompilerParams(
            dimension_semantics=("parallel", "parallel", "arbitrary"),
            vmem_limit_bytes=vmem_limit),
        cost_estimate=cost,
    )(x2, w_t, b2)

    if (Mp, Np) != (M, O):
        out = out[:M, :O]
    return out.reshape(B, S, O)


if __name__ == "__main__":
    key = jax.random.PRNGKey(0)

    def make(B, S, H, O, dtype):
        kx, kw, kb = jax.random.split(jax.random.fold_in(key, B * S * H * O), 3)
        x = jax.random.normal(kx, (B, S, H), dtype=jnp.float32).astype(dtype)
        w = (jax.random.normal(kw, (O, H), dtype=jnp.float32) * 0.05).astype(dtype)
        b = (jax.random.normal(kb, (O,), dtype=jnp.float32) * 0.05).astype(dtype)
        return x, w, b

    # 1) Module-default small shapes (hidden=32 -> output=64), exact f32 path.
    x, w, b = make(2, 8, 32, 64, jnp.float32)
    y = jax.block_until_ready(
        linear_encoder(x, w, b, compute_dtype=jnp.float32, force_pallas=True))
    y_ref = x @ w.T + b
    assert y.shape == y_ref.shape
    assert jnp.allclose(y, y_ref, atol=1e-5, rtol=1e-5)

    # 2) Shapes exercising M- and K-tiling with the default bf16 MXU path.
    x, w, b = make(4, 160, 640, 384, jnp.float32)
    y = jax.block_until_ready(linear_encoder(x, w, b))
    y_ref = x @ w.T + b
    assert y.dtype == jnp.float32
    assert jnp.allclose(y, y_ref, atol=6e-2, rtol=5e-2)

    # 3) bf16 in / bf16 out: exercises the f32-scratch accumulator variant.
    x, w, b = make(2, 64, 256, 256, jnp.bfloat16)
    y = jax.block_until_ready(linear_encoder(x, w, b, force_pallas=True))
    y_ref = (x.astype(jnp.float32) @ w.T.astype(jnp.float32) + b.astype(jnp.float32))
    assert y.dtype == jnp.bfloat16
    assert jnp.allclose(y.astype(jnp.float32), y_ref, atol=3e-2, rtol=3e-2)

    print("KERNEL_OK")
</pallas_src>

<mosaic_0001>
module attributes {stable_mosaic.version = 11 : i64} {
  func.func @_linear_kernel_f32(%arg0: i32, %arg1: i32, %arg2: i32, %arg3: memref<16x32xf32, #tpu.memory_space<vmem>>, %arg4: memref<32x128xf32, #tpu.memory_space<vmem>>, %arg5: memref<1x128xf32, #tpu.memory_space<vmem>>, %arg6: memref<16x128xf32, #tpu.memory_space<vmem>>) attributes {dimension_semantics = [#tpu.dimension_semantics<parallel>, #tpu.dimension_semantics<parallel>, #tpu.dimension_semantics<arbitrary>], iteration_bounds = array<i64: 1, 1, 1>, scalar_prefetch = 0 : i64, scratch_operands = 0 : i64, tpu.core_type = #tpu.core_type<tc>, window_params = [{transform_indices = @transform_0, window_bounds = array<i64: 16, 32>}, {transform_indices = @transform_1, window_bounds = array<i64: 32, 128>}, {transform_indices = @transform_2, window_bounds = array<i64: 1, 128>}, {transform_indices = @transform_3, window_bounds = array<i64: 16, 128>}]} {
    %c0 = arith.constant 0 : index
    %c0_0 = arith.constant 0 : index
    %0 = vector.load %arg3[%c0, %c0_0] : memref<16x32xf32, #tpu.memory_space<vmem>>, vector<16x32xf32>
    %c0_1 = arith.constant 0 : index
    %c0_2 = arith.constant 0 : index
    %1 = vector.load %arg4[%c0_1, %c0_2] : memref<32x128xf32, #tpu.memory_space<vmem>>, vector<32x128xf32>
    %cst = arith.constant dense<0.000000e+00> : vector<16x128xf32>
    %2 = tpu.matmul %0, %1, %cst {dimension_numbers = #tpu.dot_dimension_numbers<[1], [0], [0], [1], [0, 0, 1, 1], [], []>} : vector<16x32xf32>, vector<32x128xf32>, vector<16x128xf32> -> vector<16x128xf32>
    %c0_i32 = arith.constant 0 : i32
    %3 = arith.cmpi eq, %arg2, %c0_i32 : i32
    %4 = arith.extui %3 : i1 to i32
    %c0_i32_3 = arith.constant 0 : i32
    %5 = arith.cmpi ne, %4, %c0_i32_3 : i32
    scf.if %5 {
      %c0_8 = arith.constant 0 : index
      %c0_9 = arith.constant 0 : index
      %12 = vector.load %arg6[%c0_8, %c0_9] : memref<16x128xf32, #tpu.memory_space<vmem>>, vector<16x128xf32>
      tpu.vector_store %arg6[%c0_8, %c0_9], %2 {strides = array<i32>} : memref<16x128xf32, #tpu.memory_space<vmem>>, vector<16x128xf32>,
    } else {
    }
    %c0_i32_4 = arith.constant 0 : i32
    %6 = arith.cmpi sgt, %arg2, %c0_i32_4 : i32
    %7 = arith.extui %6 : i1 to i32
    %c0_i32_5 = arith.constant 0 : i32
    %8 = arith.cmpi ne, %7, %c0_i32_5 : i32
    scf.if %8 {
      %c0_8 = arith.constant 0 : index
      %c0_9 = arith.constant 0 : index
      %12 = vector.load %arg6[%c0_8, %c0_9] : memref<16x128xf32, #tpu.memory_space<vmem>>, vector<16x128xf32>
      %13 = arith.addf %12, %2 : vector<16x128xf32>
      %c0_10 = arith.constant 0 : index
      %c0_11 = arith.constant 0 : index
      %14 = vector.load %arg6[%c0_10, %c0_11] : memref<16x128xf32, #tpu.memory_space<vmem>>, vector<16x128xf32>
      tpu.vector_store %arg6[%c0_10, %c0_11], %13 {strides = array<i32>} : memref<16x128xf32, #tpu.memory_space<vmem>>, vector<16x128xf32>,
    } else {
    }
    %c0_i32_6 = arith.constant 0 : i32
    %9 = arith.cmpi eq, %arg2, %c0_i32_6 : i32
    %10 = arith.extui %9 : i1 to i32
    %c0_i32_7 = arith.constant 0 : i32
    %11 = arith.cmpi ne, %10, %c0_i32_7 : i32
    scf.if %11 {
      %c0_8 = arith.constant 0 : index
      %c0_9 = arith.constant 0 : index
      %12 = vector.load %arg6[%c0_8, %c0_9] : memref<16x128xf32, #tpu.memory_space<vmem>>, vector<16x128xf32>
      %c0_10 = arith.constant 0 : index
      %c0_11 = arith.constant 0 : index
      %13 = vector.load %arg5[%c0_10, %c0_11] : memref<1x128xf32, #tpu.memory_space<vmem>>, vector<1x128xf32>
      %14 = vector.broadcast %13 : vector<1x128xf32> to vector<16x128xf32>
      %15 = arith.addf %12, %14 : vector<16x128xf32>
      %c0_12 = arith.constant 0 : index
      %c0_13 = arith.constant 0 : index
      %16 = vector.load %arg6[%c0_12, %c0_13] : memref<16x128xf32, #tpu.memory_space<vmem>>, vector<16x128xf32>
      tpu.vector_store %arg6[%c0_12, %c0_13], %15 {strides = array<i32>} : memref<16x128xf32, #tpu.memory_space<vmem>>, vector<16x128xf32>,
    } else {
    }
    return
  }
  func.func @transform_0(%arg0: i32, %arg1: i32, %arg2: i32) -> (i32, i32) {
    %c0_i32 = arith.constant 0 : i32
    return %arg0, %arg2 : i32, i32
  }
  func.func @transform_1(%arg0: i32, %arg1: i32, %arg2: i32) -> (i32, i32) {
    %c0_i32 = arith.constant 0 : i32
    return %arg2, %arg1 : i32, i32
  }
  func.func @transform_2(%arg0: i32, %arg1: i32, %arg2: i32) -> (i32, i32) {
    %c0_i32 = arith.constant 0 : i32
    %c0_i32_0 = arith.constant 0 : i32
    return %c0_i32, %arg1 : i32, i32
  }
  func.func @transform_3(%arg0: i32, %arg1: i32, %arg2: i32) -> (i32, i32) {
    %c0_i32 = arith.constant 0 : i32
    return %arg0, %arg1 : i32, i32
  }
}

</mosaic_0001>

<bundles_post_ra>
// kernel: tpu_custom_call.1
= control target key start
LH: loop header
LB: loop body
LE: loop exit
PB: predicated region body
PF: predicated region fallthrough
CT: control target
= control target key end

     0   :  { %8 = vsyncpa [#allocation3], 0  ;;  %s359_s0 = inlined_call_operand.hbm [shape: f32[16,32], index: 0, kind: input, shape index: {}]   ;;  %s360_s1 = inlined_call_operand.hbm [shape: f32[32,128], index: 1, kind: input, shape index: {}]   ;;  %s361_s2 = inlined_call_operand.vmem [shape: f32[1,128], index: 2, kind: input, shape index: {}]   ;;  %s362_s3 = inlined_call_operand.hbm [shape: f32[16,128], index: 3, kind: output, shape index: {}]  }
   0x1   :  { %9 = vsyncpa [#allocation6], 0 }
   0x2   :  { %10 = vsyncpa [#allocation4], 0  ;;  %s286_s12 = smov [#allocation2]   ;;  %s214_s16 = scalar_lea.hbm %s359_s0, 256 }
   0x3   :  { %s16_s13 = sshll.u32 %s286_s12, 4  ;;  %p215_p0 = scmp.ne.s32.totalorder %s359_s0, %s214_s16  ;;  %s17_s13 = int_to_ptr.vmem [resolvable:$true] %s16_s13 }
   0x4   :  { %p218_p1 = scmp.lt.u32.totalorder %s214_s16, %s359_s0 }
   0x6   :  { %p220_p2 = pnand %p218_p1, %p215_p0 }
   0x8   :  { %223 = shalt.err (!%p220_p2)
}
   0x9   :  { %s224_s21 = scalar_lea.vmem %s17_s13, 256  ;;  %p229_p4 = scmp.lt.s32.totalorder %s17_s13, %s17_s13 }
   0xa   :  { %p225_p3 = scmp.ne.s32.totalorder %s17_s13, %s224_s21  ;;  %p230_p5 = scmp.lt.s32.totalorder %s224_s21, %s224_s21 }
   0xc   :  { %p231_p6 = por %p230_p5, %p229_p4 }
   0xe   :  { %p232_p7 = pnand %p231_p6, %p225_p3 }
  0x10   :  { %235 = shalt.err (!%p232_p7)
}
  0x11   :  { %s287_s22 = smov 128   ;;  %s288_s23 = smov 8  }
  0x12   :  { %22 = dma.hbm_to_vmem [thread:$0]  %s359_s0, 256, %s17_s13, [#allocation3], %s287_s22, %s287_s22, %s288_s23  }
  0x13   :  { %s289_s26 = smov [#allocation5]   ;;  %s236_s30 = scalar_lea.hbm %s360_s1, 512 }
  0x14   :  { %s28_s27 = sshll.u32 %s289_s26, 4  ;;  %p237_p8 = scmp.ne.s32.totalorder %s360_s1, %s236_s30  ;;  %s29_s27 = int_to_ptr.vmem [resolvable:$true] %s28_s27 }
  0x15   :  { %p240_p9 = scmp.lt.u32.totalorder %s236_s30, %s360_s1 }
  0x17   :  { %p242_p10 = pnand %p240_p9, %p237_p8 }
  0x19   :  { %245 = shalt.err (!%p242_p10)
}
  0x1a   :  { %s246_s8 = scalar_lea.vmem %s29_s27, 512  ;;  %p251_p12 = scmp.lt.s32.totalorder %s29_s27, %s29_s27 }
  0x1b   :  { %p247_p11 = scmp.ne.s32.totalorder %s29_s27, %s246_s8  ;;  %p252_p13 = scmp.lt.s32.totalorder %s246_s8, %s246_s8 }
  0x1d   :  { %p253_p0 = por %p252_p13, %p251_p12 }
  0x1f   :  { %p254_p1 = pnand %p253_p0, %p247_p11 }
  0x21   :  { %257 = shalt.err (!%p254_p1)
}
  0x22   :  { %34 = dma.hbm_to_vmem [thread:$0]  %s360_s1, 512, %s29_s27, [#allocation6], %s287_s22, %s287_s22, %s288_s23  }
  0x23   :  { %280 = dma.done.wait [#allocation3], 256  }
  0x24   :  { %281 = vsyncadd [#allocation3], 4294967040 }
  0x25   :  { %282 = dma.done.wait [#allocation6], 512  }
  0x26   :  { %283 = vsyncadd [#allocation6], 4294966784  ;;  %vm49_vm0 = vcmask 261120   ;;  %v45_v0 = vld [vmem:[#allocation5] sm:$0xff]  ;;  %v46_v1 = vld [vmem:[#allocation5 + $0x8] sm:$0xff]  ;;  %s290_s11 = smov [#allocation7]  }
  0x27   :  { %v47_v2 = vld [vmem:[#allocation5 + $0x10] sm:$0xff]  ;;  %v201_v3 = vpack.c.bf16 %v46_v1, %v45_v0  ;;  %v48_v4 = vld [vmem:[#allocation5 + $0x18] sm:$0xff]  ;;  %s168_s12 = sshll.u32 %s290_s11, 4  ;;  %s169_s12 = int_to_ptr.vmem [resolvable:$true] %s168_s12 }
  0x28   :  { %v43_v5 = vld [vmem:[#allocation2] sm:$0xff]  ;;  %v205_v6 = vpack.c.bf16 %v48_v4, %v47_v2  ;;  %v44_v7 = vld [vmem:[#allocation2 + $0x8] sm:$0xff]  ;;  %s258_s13 = scalar_lea.vmem %s169_s12, 256  ;;  %p263_p3 = scmp.lt.s32.totalorder %s169_s12, %s169_s12 }
  0x29   :  { %198 = vmatprep.mubr.msk.f32.mxu0 %vm49_vm0, %v43_v5  ;;  %202 = vmatprep.subr.bf16.mxu0 %v201_v3  ;;  %v183_v8 = vld [vmem:[%s361_s2] ss:$0 sm:$0xff]  ;;  %p259_p2 = scmp.ne.s32.totalorder %s169_s12, %s258_s13  ;;  %p264_p4 = scmp.lt.s32.totalorder %s258_s13, %s258_s13 }
  0x2a   :  { %204 = vmatpush3.bf16.msra.mxu0 %v201_v3 }
  0x2b   :  { %206 = vmatprep.subr.bf16.mxu0 %v205_v6  ;;  %p265_p5 = por %p264_p4, %p263_p3 }
  0x2d   :  { %p266_p6 = pnand %p265_p5, %p259_p2 }
  0x2e   :  { %208 = vmatpush3.bf16.msra.mxu0 %v205_v6 }
  0x31   :  { %199 = vmatmul.mubr.msk.f32.vlgmr.msra.gmra.mrb[0].mxu0 %vm49_vm0, %v44_v7 }
 0x104   :  { %v200_v9 = vpop.f32.mrb[0].mxu0 }
 0x105   :  { %v122_v10 = vpop.f32.mrb[1].mxu0  ;;  %v160_v11 = vadd.f32 %v200_v9, %v183_v8 }
 0x106   :  { %v159_v12 = vadd.f32 %v183_v8, %v122_v10 }
 0x107   :  { %162 = vst [vmem:[#allocation7 + $0x8] sm:$0xff] %v160_v11 }
 0x108   :  { %161 = vst [vmem:[#allocation7] sm:$0xff] %v159_v12 }
 0x109   :  { %269 = shalt.err (!%p266_p6)
}
 0x10a   :  { %s270_s2 = scalar_lea.hbm %s362_s3, 256 }
 0x10b   :  { %p271_p7 = scmp.ne.s32.totalorder %s362_s3, %s270_s2  ;;  %p274_p8 = scmp.lt.u32.totalorder %s270_s2, %s362_s3 }
 0x10d   :  { %p276_p9 = pnand %p274_p8, %p271_p7 }
 0x10f   :  { %279 = shalt.err (!%p276_p9)
}
 0x110   :  { %174 = dma.vmem_to_hbm [thread:$0]  %s169_s12, 256, %s362_s3, [#allocation4], %s287_s22, %s287_s22, %s288_s23  }
 0x111   :  { %284 = dma.done.wait [#allocation4], 256  }
 0x112   :  { %285 = vsyncadd [#allocation4], 4294967040 }
 0x113   :  { %178 = vsyncpa [#allocation3], 1 }
 0x114   :  { %179 = vsyncpa [#allocation6], 1 }
 0x115   :  { %180 = vsyncpa [#allocation4], 1 }

</bundles_post_ra>
